<compile_context>
chip_gen: v5e
topology: v5e:2x2
jax: 0.10.0
libtpu: 0.0.40
codegen_flags: <defaults>
</compile_context>

<pallas_src>
import jax
import jax.numpy as jnp
from jax.experimental import pallas as pl
from jax.experimental.pallas import tpu as pltpu

LN_EPS = 1e-5


def _round_up(a, b):
    return ((a + b - 1) // b) * b


def _ffn_kernel(x_ref, w1_ref, b1_ref, w2_ref, b2_ref, g_ref, beta_ref,
                o_ref, acc_ref):
    # grid = (row_tiles, f_chunks); axis 1 (F) is the reduction axis.
    # x_ref: (TM, D)  w1_ref: (D, FC)  b1_ref: (1, FC)
    # w2_ref: (FC, D) b2_ref/g_ref/beta_ref: (1, D)  acc_ref: (TM, D) f32
    k = pl.program_id(1)

    @pl.when(k == 0)
    def _init():
        acc_ref[...] = jnp.zeros_like(acc_ref)

    # Matmuls in the operands' native storage dtype; f32 accumulation on MXU.
    h = jnp.dot(x_ref[...], w1_ref[...], preferred_element_type=jnp.float32)
    h = jnp.maximum(h + b1_ref[...].astype(jnp.float32), 0.0)
    acc_ref[...] += jnp.dot(h.astype(w2_ref.dtype), w2_ref[...],
                            preferred_element_type=jnp.float32)

    @pl.when(k == pl.num_programs(1) - 1)
    def _finalize():
        # residual + LayerNorm over the model dim, all in f32
        x = x_ref[...].astype(jnp.float32)
        z = x + acc_ref[...] + b2_ref[...].astype(jnp.float32)
        mean = jnp.mean(z, axis=-1, keepdims=True)
        zc = z - mean
        var = jnp.mean(zc * zc, axis=-1, keepdims=True)
        inv = jax.lax.rsqrt(var + LN_EPS)
        out = (zc * inv * g_ref[...].astype(jnp.float32)
               + beta_ref[...].astype(jnp.float32))
        o_ref[...] = out.astype(o_ref.dtype)


def positional_wise_feed_forward(x, w1, b1, w2, b2, gamma, beta, *,
                                 row_tile=256, f_chunk=512):
    """x: (B, L, model_dim) -> same shape/dtype.

    w1: (model_dim, ffn_dim), b1: (ffn_dim,)
    w2: (ffn_dim, model_dim), b2: (model_dim,)
    gamma, beta: (model_dim,)
    """
    B, L, D = x.shape
    F = w1.shape[1]
    M = B * L
    xf = x.reshape(M, D)

    # Row tiling: large tiles for MXU utilization; pad ragged row counts.
    pack = 16 if x.dtype == jnp.bfloat16 else 8      # sublane packing
    tm = min(_round_up(row_tile, pack), _round_up(M, pack))
    m_pad = _round_up(M, tm)
    if m_pad != M:
        xf = jnp.pad(xf, ((0, m_pad - M), (0, 0)))   # zero rows: LN stays finite

    # F chunking (must be a multiple of 128 and divide F; else use full F).
    fc = f_chunk if (F % f_chunk == 0 and f_chunk % 128 == 0) else F
    n_row_tiles = m_pad // tm
    n_f_tiles = F // fc

    b1_2d = b1.reshape(1, F)
    b2_2d = b2.reshape(1, D)
    g_2d = gamma.reshape(1, D)
    beta_2d = beta.reshape(1, D)

    x_bytes = jnp.dtype(x.dtype).itemsize
    w_bytes = jnp.dtype(w1.dtype).itemsize
    cost = pl.CostEstimate(
        flops=4 * M * D * F,                 # two M x D x F matmuls
        transcendentals=0,
        bytes_accessed=(2 * M * D * x_bytes              # x in + out
                        + 2 * D * F * w_bytes * n_row_tiles),  # weights per row tile
    )

    out = pl.pallas_call(
        _ffn_kernel,
        out_shape=jax.ShapeDtypeStruct((m_pad, D), x.dtype),
        grid_spec=pltpu.PrefetchScalarGridSpec(
            num_scalar_prefetch=0,
            grid=(n_row_tiles, n_f_tiles),
            in_specs=[
                pl.BlockSpec((tm, D), lambda i, k: (i, 0)),   # x rows (resident over k)
                pl.BlockSpec((D, fc), lambda i, k: (0, k)),   # W1 F-chunk
                pl.BlockSpec((1, fc), lambda i, k: (0, k)),   # b1 F-chunk
                pl.BlockSpec((fc, D), lambda i, k: (k, 0)),   # W2 F-chunk
                pl.BlockSpec((1, D), lambda i, k: (0, 0)),    # b2
                pl.BlockSpec((1, D), lambda i, k: (0, 0)),    # gamma
                pl.BlockSpec((1, D), lambda i, k: (0, 0)),    # beta
            ],
            out_specs=pl.BlockSpec((tm, D), lambda i, k: (i, 0)),
            scratch_shapes=[pltpu.VMEM((tm, D), jnp.float32)],  # f32 accumulator
        ),
        compiler_params=pltpu.CompilerParams(
            dimension_semantics=("parallel", "arbitrary"),
            vmem_limit_bytes=64 * 1024 * 1024,
        ),
        cost_estimate=cost,
    )(xf, w1, b1_2d, w2, b2_2d, g_2d, beta_2d)

    if m_pad != M:
        out = out[:M]
    return out.reshape(B, L, D)


def _reference(x, w1, b1, w2, b2, gamma, beta):
    # Pure-JAX reference of the PyTorch forward (dropout p=0 is identity).
    h = jnp.maximum(jnp.einsum("bld,df->blf", x, w1) + b1, 0.0)
    y = jnp.einsum("blf,fd->bld", h, w2) + b2
    z = x + y
    mean = jnp.mean(z, axis=-1, keepdims=True)
    var = jnp.mean((z - mean) ** 2, axis=-1, keepdims=True)
    return (z - mean) / jnp.sqrt(var + LN_EPS) * gamma + beta


if __name__ == "__main__":
    # small shapes consistent with the module (model_dim, ffn_dim scaled down)
    B, L, MODEL_DIM, FFN_DIM = 2, 8, 32, 128

    key = jax.random.PRNGKey(0)
    k_x, k_w1, k_b1, k_w2, k_b2 = jax.random.split(key, 5)

    x = jax.random.normal(k_x, (B, L, MODEL_DIM), dtype=jnp.float32)

    # deterministic synthetic parameters (Conv1d kernel-size-1 weights as matmuls)
    w1 = jax.random.normal(k_w1, (MODEL_DIM, FFN_DIM), dtype=jnp.float32) * 0.05
    b1 = jax.random.normal(k_b1, (FFN_DIM,), dtype=jnp.float32) * 0.01
    w2 = jax.random.normal(k_w2, (FFN_DIM, MODEL_DIM), dtype=jnp.float32) * 0.05
    b2 = jax.random.normal(k_b2, (MODEL_DIM,), dtype=jnp.float32) * 0.01
    gamma = jnp.ones((MODEL_DIM,), dtype=jnp.float32)   # LayerNorm weight
    beta = jnp.zeros((MODEL_DIM,), dtype=jnp.float32)   # LayerNorm bias

    out = positional_wise_feed_forward(x, w1, b1, w2, b2, gamma, beta)
    out = jax.block_until_ready(out)

    ref = _reference(x, w1, b1, w2, b2, gamma, beta)
    assert out.shape == (B, L, MODEL_DIM)
    assert jnp.allclose(out, ref, atol=1e-4, rtol=1e-4), "mismatch vs reference"

    # TODO(synk): dropout is p=0.0 in the module config, so it is dropped (identity).
    print("KERNEL_OK")
</pallas_src>

<mosaic_0001>
module attributes {stable_mosaic.version = 11 : i64} {
  func.func @_ffn_kernel(%arg0: i32, %arg1: i32, %arg2: memref<16x32xf32, #tpu.memory_space<vmem>>, %arg3: memref<32x128xf32, #tpu.memory_space<vmem>>, %arg4: memref<1x128xf32, #tpu.memory_space<vmem>>, %arg5: memref<128x32xf32, #tpu.memory_space<vmem>>, %arg6: memref<1x32xf32, #tpu.memory_space<vmem>>, %arg7: memref<1x32xf32, #tpu.memory_space<vmem>>, %arg8: memref<1x32xf32, #tpu.memory_space<vmem>>, %arg9: memref<16x32xf32, #tpu.memory_space<vmem>>, %arg10: memref<16x32xf32, #tpu.memory_space<vmem>>) attributes {dimension_semantics = [#tpu.dimension_semantics<parallel>, #tpu.dimension_semantics<arbitrary>], iteration_bounds = array<i64: 1, 1>, scalar_prefetch = 0 : i64, scratch_operands = 1 : i64, tpu.core_type = #tpu.core_type<tc>, window_params = [{transform_indices = @transform_0, window_bounds = array<i64: 16, 32>}, {transform_indices = @transform_1, window_bounds = array<i64: 32, 128>}, {transform_indices = @transform_2, window_bounds = array<i64: 1, 128>}, {transform_indices = @transform_3, window_bounds = array<i64: 128, 32>}, {pipeline_mode = #tpu.pipeline_mode<synchronous>, transform_indices = @transform_4, window_bounds = array<i64: 1, 32>}, {pipeline_mode = #tpu.pipeline_mode<synchronous>, transform_indices = @transform_5, window_bounds = array<i64: 1, 32>}, {pipeline_mode = #tpu.pipeline_mode<synchronous>, transform_indices = @transform_6, window_bounds = array<i64: 1, 32>}, {transform_indices = @transform_7, window_bounds = array<i64: 16, 32>}]} {
    %c0_i32 = arith.constant 0 : i32
    %0 = arith.cmpi eq, %arg1, %c0_i32 : i32
    %1 = arith.extui %0 : i1 to i32
    %c0_i32_0 = arith.constant 0 : i32
    %2 = arith.cmpi ne, %1, %c0_i32_0 : i32
    scf.if %2 {
      %cst_16 = arith.constant 0.000000e+00 : f32
      %19 = vector.broadcast %cst_16 : f32 to vector<16x32xf32>
      %c0_17 = arith.constant 0 : index
      %c0_18 = arith.constant 0 : index
      %20 = vector.load %arg10[%c0_17, %c0_18] : memref<16x32xf32, #tpu.memory_space<vmem>>, vector<16x32xf32>
      tpu.vector_store %arg10[%c0_17, %c0_18], %19 {strides = array<i32>} : memref<16x32xf32, #tpu.memory_space<vmem>>, vector<16x32xf32>,
    } else {
    }
    %c0 = arith.constant 0 : index
    %c0_1 = arith.constant 0 : index
    %3 = vector.load %arg2[%c0, %c0_1] : memref<16x32xf32, #tpu.memory_space<vmem>>, vector<16x32xf32>
    %c0_2 = arith.constant 0 : index
    %c0_3 = arith.constant 0 : index
    %4 = vector.load %arg3[%c0_2, %c0_3] : memref<32x128xf32, #tpu.memory_space<vmem>>, vector<32x128xf32>
    %cst = arith.constant dense<0.000000e+00> : vector<16x128xf32>
    %5 = tpu.matmul %3, %4, %cst {dimension_numbers = #tpu.dot_dimension_numbers<[1], [0], [0], [1], [0, 0, 1, 1], [], []>} : vector<16x32xf32>, vector<32x128xf32>, vector<16x128xf32> -> vector<16x128xf32>
    %c0_4 = arith.constant 0 : index
    %c0_5 = arith.constant 0 : index
    %6 = vector.load %arg4[%c0_4, %c0_5] : memref<1x128xf32, #tpu.memory_space<vmem>>, vector<1x128xf32>
    %7 = vector.broadcast %6 : vector<1x128xf32> to vector<16x128xf32>
    %8 = arith.addf %5, %7 : vector<16x128xf32>
    %cst_6 = arith.constant 0.000000e+00 : f32
    %9 = vector.broadcast %cst_6 : f32 to vector<16x128xf32>
    %10 = arith.maximumf %8, %9 : vector<16x128xf32>
    %c0_7 = arith.constant 0 : index
    %c0_8 = arith.constant 0 : index
    %11 = vector.load %arg10[%c0_7, %c0_8] : memref<16x32xf32, #tpu.memory_space<vmem>>, vector<16x32xf32>
    %c0_9 = arith.constant 0 : index
    %c0_10 = arith.constant 0 : index
    %12 = vector.load %arg5[%c0_9, %c0_10] : memref<128x32xf32, #tpu.memory_space<vmem>>, vector<128x32xf32>
    %cst_11 = arith.constant dense<0.000000e+00> : vector<16x32xf32>
    %13 = tpu.matmul %10, %12, %cst_11 {dimension_numbers = #tpu.dot_dimension_numbers<[1], [0], [0], [1], [0, 0, 1, 1], [], []>} : vector<16x128xf32>, vector<128x32xf32>, vector<16x32xf32> -> vector<16x32xf32>
    %14 = arith.addf %11, %13 : vector<16x32xf32>
    %c0_12 = arith.constant 0 : index
    %c0_13 = arith.constant 0 : index
    %15 = vector.load %arg10[%c0_12, %c0_13] : memref<16x32xf32, #tpu.memory_space<vmem>>, vector<16x32xf32>
    tpu.vector_store %arg10[%c0_12, %c0_13], %14 {strides = array<i32>} : memref<16x32xf32, #tpu.memory_space<vmem>>, vector<16x32xf32>,
    %c0_i32_14 = arith.constant 0 : i32
    %16 = arith.cmpi eq, %arg1, %c0_i32_14 : i32
    %17 = arith.extui %16 : i1 to i32
    %c0_i32_15 = arith.constant 0 : i32
    %18 = arith.cmpi ne, %17, %c0_i32_15 : i32
    scf.if %18 {
      %c0_16 = arith.constant 0 : index
      %c0_17 = arith.constant 0 : index
      %19 = vector.load %arg2[%c0_16, %c0_17] : memref<16x32xf32, #tpu.memory_space<vmem>>, vector<16x32xf32>
      %c0_18 = arith.constant 0 : index
      %c0_19 = arith.constant 0 : index
      %20 = vector.load %arg10[%c0_18, %c0_19] : memref<16x32xf32, #tpu.memory_space<vmem>>, vector<16x32xf32>
      %21 = arith.addf %19, %20 : vector<16x32xf32>
      %c0_20 = arith.constant 0 : index
      %c0_21 = arith.constant 0 : index
      %22 = vector.load %arg6[%c0_20, %c0_21] : memref<1x32xf32, #tpu.memory_space<vmem>>, vector<1x32xf32>
      %23 = vector.broadcast %22 : vector<1x32xf32> to vector<16x32xf32>
      %24 = arith.addf %21, %23 : vector<16x32xf32>
      %cst_22 = arith.constant dense<0.000000e+00> : vector<16xf32>
      %25 = vector.multi_reduction <add>, %24, %cst_22 [1] : vector<16x32xf32> to vector<16xf32>
      %26 = vector.shape_cast %25 : vector<16xf32> to vector<16x1xf32>
      %cst_23 = arith.constant 3.200000e+01 : f32
      %27 = vector.broadcast %cst_23 : f32 to vector<16x1xf32>
      %28 = arith.divf %26, %27 : vector<16x1xf32>
      %29 = vector.broadcast %28 : vector<16x1xf32> to vector<16x32xf32>
      %30 = arith.subf %24, %29 : vector<16x32xf32>
      %31 = arith.mulf %30, %30 : vector<16x32xf32>
      %cst_24 = arith.constant dense<0.000000e+00> : vector<16xf32>
      %32 = vector.multi_reduction <add>, %31, %cst_24 [1] : vector<16x32xf32> to vector<16xf32>
      %33 = vector.shape_cast %32 : vector<16xf32> to vector<16x1xf32>
      %cst_25 = arith.constant 3.200000e+01 : f32
      %34 = vector.broadcast %cst_25 : f32 to vector<16x1xf32>
      %35 = arith.divf %33, %34 : vector<16x1xf32>
      %cst_26 = arith.constant 9.99999974E-6 : f32
      %36 = vector.broadcast %cst_26 : f32 to vector<16x1xf32>
      %37 = arith.addf %35, %36 : vector<16x1xf32>
      %38 = math.rsqrt %37 : vector<16x1xf32>
      %39 = vector.broadcast %38 : vector<16x1xf32> to vector<16x32xf32>
      %40 = arith.mulf %30, %39 : vector<16x32xf32>
      %c0_27 = arith.constant 0 : index
      %c0_28 = arith.constant 0 : index
      %41 = vector.load %arg7[%c0_27, %c0_28] : memref<1x32xf32, #tpu.memory_space<vmem>>, vector<1x32xf32>
      %42 = vector.broadcast %41 : vector<1x32xf32> to vector<16x32xf32>
      %43 = arith.mulf %40, %42 : vector<16x32xf32>
      %c0_29 = arith.constant 0 : index
      %c0_30 = arith.constant 0 : index
      %44 = vector.load %arg8[%c0_29, %c0_30] : memref<1x32xf32, #tpu.memory_space<vmem>>, vector<1x32xf32>
      %45 = vector.broadcast %44 : vector<1x32xf32> to vector<16x32xf32>
      %46 = arith.addf %43, %45 : vector<16x32xf32>
      %c0_31 = arith.constant 0 : index
      %c0_32 = arith.constant 0 : index
      %47 = vector.load %arg9[%c0_31, %c0_32] : memref<16x32xf32, #tpu.memory_space<vmem>>, vector<16x32xf32>
      tpu.vector_store %arg9[%c0_31, %c0_32], %46 {strides = array<i32>} : memref<16x32xf32, #tpu.memory_space<vmem>>, vector<16x32xf32>,
    } else {
    }
    return
  }
  func.func @transform_0(%arg0: i32, %arg1: i32) -> (i32, i32) {
    %c0_i32 = arith.constant 0 : i32
    %c0_i32_0 = arith.constant 0 : i32
    return %arg0, %c0_i32 : i32, i32
  }
  func.func @transform_1(%arg0: i32, %arg1: i32) -> (i32, i32) {
    %c0_i32 = arith.constant 0 : i32
    %c0_i32_0 = arith.constant 0 : i32
    return %c0_i32, %arg1 : i32, i32
  }
  func.func @transform_2(%arg0: i32, %arg1: i32) -> (i32, i32) {
    %c0_i32 = arith.constant 0 : i32
    %c0_i32_0 = arith.constant 0 : i32
    return %c0_i32, %arg1 : i32, i32
  }
  func.func @transform_3(%arg0: i32, %arg1: i32) -> (i32, i32) {
    %c0_i32 = arith.constant 0 : i32
    %c0_i32_0 = arith.constant 0 : i32
    return %arg1, %c0_i32 : i32, i32
  }
  func.func @transform_4(%arg0: i32, %arg1: i32) -> (i32, i32) {
    %c0_i32 = arith.constant 0 : i32
    %c0_i32_0 = arith.constant 0 : i32
    %c0_i32_1 = arith.constant 0 : i32
    return %c0_i32, %c0_i32_0 : i32, i32
  }
  func.func @transform_5(%arg0: i32, %arg1: i32) -> (i32, i32) {
    %c0_i32 = arith.constant 0 : i32
    %c0_i32_0 = arith.constant 0 : i32
    %c0_i32_1 = arith.constant 0 : i32
    return %c0_i32, %c0_i32_0 : i32, i32
  }
  func.func @transform_6(%arg0: i32, %arg1: i32) -> (i32, i32) {
    %c0_i32 = arith.constant 0 : i32
    %c0_i32_0 = arith.constant 0 : i32
    %c0_i32_1 = arith.constant 0 : i32
    return %c0_i32, %c0_i32_0 : i32, i32
  }
  func.func @transform_7(%arg0: i32, %arg1: i32) -> (i32, i32) {
    %c0_i32 = arith.constant 0 : i32
    %c0_i32_0 = arith.constant 0 : i32
    return %arg0, %c0_i32 : i32, i32
  }
}

</mosaic_0001>

<bundles_post_ra>
// kernel: tpu_custom_call.1
= control target key start
LH: loop header
LB: loop body
LE: loop exit
PB: predicated region body
PF: predicated region fallthrough
CT: control target
= control target key end

     0   :  { %vm31_vm0 = vcmask 261120   ;;  %s420_s0 = inlined_call_operand.vmem [shape: f32[16,32], index: 0, kind: input, shape index: {}]   ;;  %s421_s1 = inlined_call_operand.vmem [shape: f32[32,128], index: 1, kind: input, shape index: {}]   ;;  %s422_s2 = inlined_call_operand.vmem [shape: f32[1,128], index: 2, kind: input, shape index: {}]   ;;  %s423_s3 = inlined_call_operand.vmem [shape: f32[128,32], index: 3, kind: input, shape index: {}]   ;;  %s424_s4 = inlined_call_operand.vmem [shape: f32[1,32], index: 4, kind: input, shape index: {}]   ;;  %s425_s5 = inlined_call_operand.vmem [shape: f32[1,32], index: 5, kind: input, shape index: {}]   ;;  %s426_s6 = inlined_call_operand.vmem [shape: f32[1,32], index: 6, kind: input, shape index: {}]   ;;  %s427_s7 = inlined_call_operand.hbm [shape: f32[16,32], index: 7, kind: output, shape index: {}]  }
   0x1   :  { %v39_v0 = vld [vmem:[%s421_s1 + $0x18] sm:$0xff]  ;;  %v38_v1 = vld [vmem:[%s421_s1 + $0x10] sm:$0xff]  ;;  %v37_v2 = vld [vmem:[%s421_s1 + $0x8] sm:$0xff] }
   0x2   :  { %63 = vmatpush.msra.mxu0 %v39_v0  ;;  %v93_v3 = vld [vmem:[%s423_s3 + $0x78] sm:$0xff]  ;;  %v92_v4 = vld [vmem:[%s423_s3 + $0x70] sm:$0xff]  ;;  %v36_v5 = vld [vmem:[%s421_s1] sm:$0xff] }
   0x3   :  { %94 = vmatpush.msra.mxu1 %v93_v3  ;;  %v91_v6 = vld [vmem:[%s423_s3 + $0x68] sm:$0xff]  ;;  %221 = vmatpush.msra.mxu2 %v93_v3  ;;  %v347_v7 = vld [vmem:[%s420_s0] sm:$0xff] }
   0x4   :  { %64 = vmatpush.msra.mxu0 %v38_v1  ;;  %v90_v8 = vld [vmem:[%s423_s3 + $0x60] sm:$0xff] }
   0x5   :  { %95 = vmatpush.msra.mxu1 %v92_v4  ;;  %222 = vmatpush.msra.mxu2 %v92_v4 }
   0x6   :  { %65 = vmatpush.msra.mxu0 %v37_v2 }
   0x7   :  { %96 = vmatpush.msra.mxu1 %v91_v6 }
   0x8   :  { %66 = vmatpush.msra.mxu0 %v36_v5 }
   0x9   :  { %12 = vsyncpa [#allocation4], 0  ;;  %219 = vmatmul.msk.f32.vlgmr.msra.gmra.mxu0 %vm31_vm0, %v347_v7  ;;  %v89_v9 = vld [vmem:[%s423_s3 + $0x58] sm:$0xff]  ;;  %223 = vmatpush.msra.mxu2 %v91_v6  ;;  %v88_v10 = vld [vmem:[%s423_s3 + $0x50] sm:$0xff]  ;;  %v278_v22 = vmov 0.0   ;;  %v279_v45 = vmov 32.0  }
   0xa   :  { %97 = vmatpush.msra.mxu1 %v90_v8  ;;  %v87_v11 = vld [vmem:[%s423_s3 + $0x48] sm:$0xff]  ;;  %v86_v13 = vld [vmem:[%s423_s3 + $0x40] sm:$0xff]  ;;  %v85_v14 = vld [vmem:[%s423_s3 + $0x38] sm:$0xff]  ;;  %32 = vst.msk [vmem:[#allocation2] sm:$0xff] %vm31_vm0, %v278_v22  ;;  %246 = vrcp.f32 %v279_v45  ;;  %s281_s27 = smov 128   ;;  %s282_s28 = smov 8  }
   0xb   :  { %224 = vmatpush.msra.mxu2 %v90_v8  ;;  %v35_v12 = vld [vmem:[%s420_s0 + $0x8] sm:$0xff]  ;;  %v84_v15 = vld [vmem:[%s423_s3 + $0x30] sm:$0xff]  ;;  %v82_v17 = vld [vmem:[%s423_s3 + $0x20] sm:$0xff]  ;;  %33 = vst.msk [vmem:[#allocation2 + $0x8] sm:$0xff] %vm31_vm0, %v278_v22 }
   0xc   :  { %98 = vmatpush.msra.mxu1 %v89_v9  ;;  %v83_v16 = vld [vmem:[%s423_s3 + $0x28] sm:$0xff]  ;;  %v81_v18 = vld [vmem:[%s423_s3 + $0x18] sm:$0xff]  ;;  %v80_v19 = vld [vmem:[%s423_s3 + $0x10] sm:$0xff] }
   0xd   :  { %225 = vmatpush.msra.mxu2 %v89_v9  ;;  %v79_v20 = vld [vmem:[%s423_s3 + $0x8] sm:$0xff]  ;;  %v78_v21 = vld [vmem:[%s423_s3] sm:$0xff] }
   0xe   :  { %99 = vmatpush.msra.mxu1 %v88_v10  ;;  %v242_v23 = vld [vmem:[%s422_s2] ss:$0 sm:$0xff] }
   0xf   :  { %226 = vmatpush.msra.mxu2 %v88_v10  ;;  %v243_v33 = vld [vmem:[%s424_s4] ss:$0 sm:$0xff] }
  0x10   :  { %100 = vmatpush.msra.mxu1 %v87_v11  ;;  %v247_v46 = vpop.eup %246  ;;  %v244_v10 = vld [vmem:[%s425_s5] ss:$0 sm:$0xff]  ;;  %s280_s5 = smov [#allocation3]  }
  0x11   :  { %220 = vmatmul.msk.f32.gmra.mxu0 %vm31_vm0, %v35_v12  ;;  %227 = vmatpush.msra.mxu2 %v87_v11  ;;  %v76_v30 = vld [vmem:[#allocation2] sm:$0xff]  ;;  %v143_v47 = vmul.f32 32.0, %v247_v46  ;;  %vm147_vm1 = vweird.f32 %v247_v46  ;;  %s205_s24 = sshll.u32 %s280_s5, 4  ;;  %s206_s24 = int_to_ptr.vmem [resolvable:$true] %s205_s24 }
  0x12   :  { %101 = vmatpush.msra.mxu1 %v86_v13  ;;  %v77_v36 = vld [vmem:[#allocation2 + $0x8] sm:$0xff] }
  0x13   :  { %228 = vmatpush.msra.mxu2 %v86_v13  ;;  %v144_v48 = vsub.f32 1.0, %v143_v47  ;;  %v245_v13 = vld [vmem:[%s426_s6] ss:$0 sm:$0xff]  ;;  %s207_s6 = sshll.u32 %s427_s7, 4  ;;  %s208_s6 = int_to_ptr.hbm [resolvable:$true] %s207_s6 }
  0x14   :  { %102 = vmatpush.msra.mxu1 %v85_v14 }
  0x15   :  { %229 = vmatpush.msra.mxu2 %v85_v14  ;;  %v145_v49 = vmul.f32 %v247_v46, %v144_v48 }
  0x16   :  { %103 = vmatpush.msra.mxu1 %v84_v15 }
  0x17   :  { %230 = vmatpush.msra.mxu2 %v84_v15  ;;  %v146_v50 = vadd.f32 %v247_v46, %v145_v49 }
  0x18   :  { %104 = vmatpush.msra.mxu1 %v83_v16 }
  0x19   :  { %231 = vmatpush.msra.mxu2 %v83_v16  ;;  %v148_v51 = vsel %vm147_vm1, %v247_v46, %v146_v50 }
  0x1a   :  { %105 = vmatpush.msra.mxu1 %v82_v17 }
  0x1b   :  { %232 = vmatpush.msra.mxu2 %v82_v17 }
  0x1c   :  { %106 = vmatpush.msra.mxu1 %v81_v18 }
  0x1d   :  { %233 = vmatpush.msra.mxu2 %v81_v18 }
  0x1e   :  { %107 = vmatpush.msra.mxu1 %v80_v19 }
  0x1f   :  { %234 = vmatpush.msra.mxu2 %v80_v19 }
  0x20   :  { %108 = vmatpush.msra.mxu1 %v79_v20 }
  0x21   :  { %235 = vmatpush.msra.mxu2 %v79_v20 }
  0x22   :  { %109 = vmatpush.msra.mxu1 %v78_v21 }
  0x23   :  { %236 = vmatpush.msra.mxu2 %v78_v21 }
  0x86   :  { %v68_v24 = vpop.f32.mrf.mxu0 }
  0x87   :  { %v69_v25 = vadd.f32 %v242_v23, %v68_v24 }
  0x89   :  { %v74_v26 = vmax.f32 %v69_v25, 0.0 }
  0x8b   :  { %110 = vmatmul.f32.vlgmr.msra.gmra.mxu1 %v74_v26 }
  0x8e   :  { %v71_v27 = vpop.f32.mrf.mxu0 }
  0x8f   :  { %v72_v28 = vadd.f32 %v242_v23, %v71_v27 }
  0x91   :  { %v75_v29 = vmax.f32 %v72_v28, 0.0 }
  0x93   :  { %113 = vmatmul.f32.vlgmr.msra.gmra.mxu2 %v75_v29 }
 0x108   :  { %v111_v31 = vpop.f32.mrf.mxu1 }
 0x109   :  { %v117_v32 = vadd.f32 %v111_v31, %v76_v30 }
 0x10b   :  { %119 = vst.msk [vmem:[#allocation2] sm:$0xff] %vm31_vm0, %v117_v32 }
 0x112   :  { %v126_v34 = vld [vmem:[#allocation2] sm:$0xff] }
 0x113   :  { %v128_v35 = vadd.f32 %v126_v34, %v347_v7 }
 0x115   :  { %v134_v37 = vadd.f32 %v243_v33, %v128_v35 }
 0x116   :  { %v114_v38 = vpop.f32.mrf.mxu2 }
 0x117   :  { %v118_v39 = vadd.f32 %v114_v38, %v77_v36  ;;  %v136_v40 = vsel %vm31_vm0, %v134_v37, 0.0 }
 0x118   :  { %137 = vadd.xlane.f32.xlu0 %v136_v40 }
 0x119   :  { %120 = vst.msk [vmem:[#allocation2 + $0x8] sm:$0xff] %vm31_vm0, %v118_v39 }
 0x120   :  { %v127_v41 = vld [vmem:[#allocation2 + $0x8] sm:$0xff] }
 0x121   :  { %v129_v42 = vadd.f32 %v127_v41, %v35_v12 }
 0x123   :  { %v135_v43 = vadd.f32 %v243_v33, %v129_v42 }
 0x125   :  { %v139_v44 = vsel %vm31_vm0, %v135_v43, 0.0 }
 0x126   :  { %140 = vadd.xlane.f32.xlu0 %v139_v44 }
 0x18b   :  { %v138_v52 = vpop.xlane.xlu0 %137 }
 0x18c   :  { %v149_v53 = vmul.f32 %v148_v51, %v138_v52 }
 0x18e   :  { %v151_v54 = vsub.f32 %v134_v37, %v149_v53 }
 0x190   :  { %v153_v55 = vmul.f32 %v151_v54, %v151_v54 }
 0x192   :  { %v155_v56 = vsel %vm31_vm0, %v153_v55, 0.0 }
 0x193   :  { %156 = vadd.xlane.f32.xlu1 %v155_v56 }
 0x199   :  { %v141_v57 = vpop.xlane.xlu0 %140 }
 0x19a   :  { %v150_v58 = vmul.f32 %v148_v51, %v141_v57 }
 0x19c   :  { %v152_v59 = vsub.f32 %v135_v43, %v150_v58 }
 0x19e   :  { %v154_v60 = vmul.f32 %v152_v59, %v152_v59 }
 0x1a0   :  { %v158_v61 = vsel %vm31_vm0, %v154_v60, 0.0 }
 0x1a1   :  { %159 = vadd.xlane.f32.xlu1 %v158_v61 }
 0x206   :  { %v157_v62 = vpop.xlane.xlu1 %156 }
 0x207   :  { %v161_v63 = vmul.f32 %v157_v62, %v148_v51 }
 0x209   :  { %v163_v0 = vadd.f32 1e-05, %v161_v63 }
 0x20b   :  { %248 = vrsqrt.f32 %v163_v0  ;;  %vm171_vm3 = vweird.f32 %v163_v0 }
 0x211   :  { %v249_v1 = vpop.eup %248 }
 0x212   :  { %v166_v2 = vmul.f32 %v249_v1, %v163_v0  ;;  %vm172_vm2 = vweird.f32 %v249_v1 }
 0x213   :  { %vm173_vm4 = vmor %vm171_vm3, %vm172_vm2 }
 0x214   :  { %v167_v3 = vmul.f32 %v249_v1, %v166_v2  ;;  %v160_v4 = vpop.xlane.xlu1 %159 }
 0x215   :  { %v162_v5 = vmul.f32 %v160_v4, %v148_v51 }
 0x216   :  { %v168_v6 = vmul.f32 0.5, %v167_v3 }
 0x217   :  { %v164_v7 = vadd.f32 1e-05, %v162_v5 }
 0x218   :  { %v169_v8 = vsub.f32 1.5, %v168_v6 }
 0x219   :  { %250 = vrsqrt.f32 %v164_v7  ;;  %vm181_vm6 = vweird.f32 %v164_v7 }
 0x21a   :  { %v170_v9 = vmul.f32 %v249_v1, %v169_v8 }
 0x21c   :  { %v174_v11 = vsel %vm173_vm4, %v249_v1, %v170_v9 }
 0x21d   :  { %v185_v12 = vmul.f32 %v174_v11, %v151_v54 }
 0x21f   :  { %v251_v14 = vpop.eup %250  ;;  %v191_v15 = vmul.f32 %v244_v10, %v185_v12 }
 0x220   :  { %v176_v16 = vmul.f32 %v251_v14, %v164_v7  ;;  %vm182_vm5 = vweird.f32 %v251_v14 }
 0x221   :  { %v197_v17 = vadd.f32 %v245_v13, %v191_v15  ;;  %vm183_vm7 = vmor %vm181_vm6, %vm182_vm5 }
 0x222   :  { %v177_v18 = vmul.f32 %v251_v14, %v176_v16 }
 0x223   :  { %199 = vst.msk [vmem:[#allocation3] sm:$0xff] %vm31_vm0, %v197_v17 }
 0x224   :  { %v178_v19 = vmul.f32 0.5, %v177_v18 }
 0x226   :  { %v179_v20 = vsub.f32 1.5, %v178_v19 }
 0x228   :  { %v180_v21 = vmul.f32 %v251_v14, %v179_v20 }
 0x22a   :  { %v184_v22 = vsel %vm183_vm7, %v251_v14, %v180_v21 }
 0x22b   :  { %v186_v23 = vmul.f32 %v184_v22, %v152_v59 }
 0x22d   :  { %v192_v24 = vmul.f32 %v244_v10, %v186_v23 }
 0x22f   :  { %v198_v25 = vadd.f32 %v245_v13, %v192_v24 }
 0x231   :  { %200 = vst.msk [vmem:[#allocation3 + $0x8] sm:$0xff] %vm31_vm0, %v198_v25 }
 0x232   :  { %213 = dma.vmem_to_hbm [thread:$0]  %s206_s24, 256, %s208_s6, [#allocation4], %s281_s27, %s281_s27, %s282_s28  }
 0x233   :  { %276 = dma.done.wait [#allocation4], 256  }
 0x234   :  { %277 = vsyncadd [#allocation4], 4294967040 }
 0x235   :  { %218 = vsyncpa [#allocation4], 1 }

</bundles_post_ra>
